<compile_context>
chip_gen: v6e
topology: v6e:2x2x1
jax: 0.10.0
libtpu: 0.0.40
codegen_flags: <defaults>
</compile_context>

<pallas_src>
import math
from functools import partial

import jax
import jax.numpy as jnp
from jax.experimental import pallas as pl
from jax.experimental.pallas import tpu as pltpu

D_IN = 2000
HIDDEN = [6, 4, 3]
D_OUT = 1

TILE_B_MAX = 1024                 # rows per grid step (1024*2000*4B = 8 MiB f32 tile)
VMEM_LIMIT_BYTES = 40 * 1024 * 1024


# --------------------------------------------------------------------------
# Pallas kernel: one batch tile of the whole 4-layer MLP (matmuls + bias +
# tanh). The tiny fc2/fc3/fc4 matmuls and tanh calls hide completely under
# the next x-tile DMA, so everything stays fused in a single kernel.
# --------------------------------------------------------------------------
def _mlp_kernel(x_ref,
                w1_ref, b1_ref,
                w2_ref, b2_ref,
                w3_ref, b3_ref,
                w4_ref, b4_ref,
                o_ref):
    # fc1: bf16 MXU feed, f32 accumulation (keeps the big matmul off the
    # critical path; tanh is saturating so bf16-in/f32-acc is numerically ok).
    x_bf16 = x_ref[...].astype(jnp.bfloat16)                    # [tile_b, 2000]
    w1_bf16 = w1_ref[...].astype(jnp.bfloat16)                  # [2000, 6]
    h1 = jnp.tanh(
        jnp.dot(x_bf16, w1_bf16, preferred_element_type=jnp.float32)
        + b1_ref[...])                                          # [tile_b, 6]

    # fc2..fc4 are tiny (6->4->3->1); keep f32 for fidelity — cost is noise.
    h2 = jnp.tanh(
        jnp.dot(h1, w2_ref[...], preferred_element_type=jnp.float32)
        + b2_ref[...])                                          # [tile_b, 4]

    h3 = jnp.tanh(
        jnp.dot(h2, w3_ref[...], preferred_element_type=jnp.float32)
        + b3_ref[...])                                          # [tile_b, 3]

    o_ref[...] = (
        jnp.dot(h3, w4_ref[...], preferred_element_type=jnp.float32)
        + b4_ref[...])                                          # [tile_b, 1]


def _round_up(n, m):
    return ((n + m - 1) // m) * m


@partial(jax.jit, static_argnames=())
def dropout_net_tanh_forward(x, params):
    """Run the fused MLP kernel. x: [B, 2000] (f32 or bf16) -> [B, 1] f32."""
    (w1, b1, w2, b2, w3, b3, w4, b4) = params
    B = x.shape[0]

    # Tile selection (no host-side padding of x):
    #   * at most TILE_B_MAX rows per step,
    #   * multiple of 8 sublanes,
    #   * at least 2 grid steps when B >= 16 so both v7x TensorCores get work,
    #   * last tile may be ragged — Pallas masks OOB reads/writes, and rows are
    #     independent, so no garbage leaks into valid outputs.
    num_tiles = max(1, pl.cdiv(B, TILE_B_MAX))
    if B >= 16:
        num_tiles = max(num_tiles, 2)
    tile_b = min(TILE_B_MAX, _round_up(pl.cdiv(B, num_tiles), 8))
    grid = (pl.cdiv(B, tile_b),)

    # Weights/biases: full-array blocks with a constant index_map -> DMA'd
    # once, resident in VMEM across all grid steps.
    resident = lambda arr: pl.BlockSpec(arr.shape, lambda i: (0,) * arr.ndim)

    # Advisory cost hint for XLA scheduling around this mem-bound call.
    flops = 2 * B * (D_IN * 6 + 6 * 4 + 4 * 3 + 3 * 1)
    bytes_accessed = (B * D_IN * x.dtype.itemsize + B * D_OUT * 4
                      + sum(int(a.size) * 4 for a in params))
    cost = pl.CostEstimate(flops=flops,
                           transcendentals=13 * B,
                           bytes_accessed=bytes_accessed)

    out = pl.pallas_call(
        _mlp_kernel,
        out_shape=jax.ShapeDtypeStruct((B, D_OUT), jnp.float32),
        grid=grid,
        in_specs=[pl.BlockSpec((tile_b, D_IN), lambda i: (i, 0)),
                  resident(w1), resident(b1),
                  resident(w2), resident(b2),
                  resident(w3), resident(b3),
                  resident(w4), resident(b4)],
        out_specs=pl.BlockSpec((tile_b, D_OUT), lambda i: (i, 0)),
        compiler_params=pltpu.CompilerParams(
            dimension_semantics=("parallel",),
            vmem_limit_bytes=VMEM_LIMIT_BYTES),
        cost_estimate=cost,
    )(x, w1, b1, w2, b2, w3, b3, w4, b4)

    return out


# --------------------------------------------------------------------------
# Deterministic parameter init (mimics PyTorch nn.Linear default: U(-k, k),
# k = 1/sqrt(in_features)). Weights are stored as [in, out].
# --------------------------------------------------------------------------
def init_params(key):
    dims = [(D_IN, 6), (6, 4), (4, 3), (3, D_OUT)]
    params = []
    for (fan_in, fan_out) in dims:
        key, kw, kb = jax.random.split(key, 3)
        bound = 1.0 / math.sqrt(fan_in)
        w = jax.random.uniform(kw, (fan_in, fan_out), jnp.float32,
                               minval=-bound, maxval=bound)
        b = jax.random.uniform(kb, (1, fan_out), jnp.float32,
                               minval=-bound, maxval=bound)
        params += [w, b]
    return tuple(params)


def _reference_forward(x, params):
    """Plain-JAX f32 reference (eval-mode dropout = identity).

    precision=HIGHEST so the XLA reference matmuls are f32-accurate (TPU's
    default f32 matmul precision is reduced); the kernel's fc1 is bf16-fed,
    so the comparison uses a correspondingly relaxed tolerance.
    """
    (w1, b1, w2, b2, w3, b3, w4, b4) = params
    hp = jax.lax.Precision.HIGHEST
    h = jnp.tanh(jnp.dot(x, w1, precision=hp) + b1)
    h = jnp.tanh(jnp.dot(h, w2, precision=hp) + b2)
    h = jnp.tanh(jnp.dot(h, w3, precision=hp) + b3)
    return jnp.dot(h, w4, precision=hp) + b4


if __name__ == "__main__":
    key = jax.random.PRNGKey(0)
    key, kx = jax.random.split(key)

    # B=20 exercises the multi-tile path (grid=2) AND the ragged last tile
    # (no host-side padding of x anymore).
    B = 20
    x = jax.random.normal(kx, (B, D_IN), dtype=jnp.float32)

    params = init_params(key)

    out = dropout_net_tanh_forward(x, params)
    out = jax.block_until_ready(out)

    ref = _reference_forward(x, params)
    assert out.shape == (B, D_OUT), out.shape
    max_err = float(jnp.max(jnp.abs(out - ref)))
    # Tolerance accounts for the bf16-fed fc1 MXU matmul (f32 accumulation);
    # any structural bug (indexing / masking / transpose) produces O(1) errors.
    assert jnp.allclose(out, ref, atol=5e-2, rtol=5e-2), (max_err, out, ref)

    print("KERNEL_OK")
</pallas_src>

<mosaic_0001>
module attributes {stable_mosaic.version = 11 : i64} {
  func.func @_mlp_kernel(%arg0: i32, %arg1: memref<16x2000xf32, #tpu.memory_space<vmem>>, %arg2: memref<2000x6xf32, #tpu.memory_space<vmem>>, %arg3: memref<1x6xf32, #tpu.memory_space<vmem>>, %arg4: memref<6x4xf32, #tpu.memory_space<vmem>>, %arg5: memref<1x4xf32, #tpu.memory_space<vmem>>, %arg6: memref<4x3xf32, #tpu.memory_space<vmem>>, %arg7: memref<1x3xf32, #tpu.memory_space<vmem>>, %arg8: memref<3x1xf32, #tpu.memory_space<vmem>>, %arg9: memref<1x1xf32, #tpu.memory_space<vmem>>, %arg10: memref<16x1xf32, #tpu.memory_space<vmem>>) attributes {dimension_semantics = [#tpu.dimension_semantics<parallel>], iteration_bounds = array<i64: 2>, scalar_prefetch = 0 : i64, scratch_operands = 0 : i64, tpu.core_type = #tpu.core_type<tc>, window_params = [{transform_indices = @transform_0, window_bounds = array<i64: 16, 2000>}, {pipeline_mode = #tpu.pipeline_mode<synchronous>, transform_indices = @transform_1, window_bounds = array<i64: 2000, 6>}, {pipeline_mode = #tpu.pipeline_mode<synchronous>, transform_indices = @transform_2, window_bounds = array<i64: 1, 6>}, {pipeline_mode = #tpu.pipeline_mode<synchronous>, transform_indices = @transform_3, window_bounds = array<i64: 6, 4>}, {pipeline_mode = #tpu.pipeline_mode<synchronous>, transform_indices = @transform_4, window_bounds = array<i64: 1, 4>}, {pipeline_mode = #tpu.pipeline_mode<synchronous>, transform_indices = @transform_5, window_bounds = array<i64: 4, 3>}, {pipeline_mode = #tpu.pipeline_mode<synchronous>, transform_indices = @transform_6, window_bounds = array<i64: 1, 3>}, {pipeline_mode = #tpu.pipeline_mode<synchronous>, transform_indices = @transform_7, window_bounds = array<i64: 3, 1>}, {pipeline_mode = #tpu.pipeline_mode<synchronous>, transform_indices = @transform_8, window_bounds = array<i64: 1, 1>}, {transform_indices = @transform_9, window_bounds = array<i64: 16, 1>}]} {
    %c0 = arith.constant 0 : index
    %c0_0 = arith.constant 0 : index
    %0 = vector.load %arg1[%c0, %c0_0] : memref<16x2000xf32, #tpu.memory_space<vmem>>, vector<16x2000xf32>
    %1 = arith.truncf %0 : vector<16x2000xf32> to vector<16x2000xbf16>
    %c0_1 = arith.constant 0 : index
    %c0_2 = arith.constant 0 : index
    %2 = vector.load %arg2[%c0_1, %c0_2] : memref<2000x6xf32, #tpu.memory_space<vmem>>, vector<2000x6xf32>
    %3 = arith.truncf %2 : vector<2000x6xf32> to vector<2000x6xbf16>
    %cst = arith.constant dense<0.000000e+00> : vector<16x6xf32>
    %4 = tpu.matmul %1, %3, %cst {dimension_numbers = #tpu.dot_dimension_numbers<[1], [0], [0], [1], [0, 0, 1, 1], [], []>} : vector<16x2000xbf16>, vector<2000x6xbf16>, vector<16x6xf32> -> vector<16x6xf32>
    %c0_3 = arith.constant 0 : index
    %c0_4 = arith.constant 0 : index
    %5 = vector.load %arg3[%c0_3, %c0_4] : memref<1x6xf32, #tpu.memory_space<vmem>>, vector<1x6xf32>
    %6 = vector.broadcast %5 : vector<1x6xf32> to vector<16x6xf32>
    %7 = arith.addf %4, %6 : vector<16x6xf32>
    %8 = math.tanh %7 : vector<16x6xf32>
    %c0_5 = arith.constant 0 : index
    %c0_6 = arith.constant 0 : index
    %9 = vector.load %arg4[%c0_5, %c0_6] : memref<6x4xf32, #tpu.memory_space<vmem>>, vector<6x4xf32>
    %cst_7 = arith.constant dense<0.000000e+00> : vector<16x4xf32>
    %10 = tpu.matmul %8, %9, %cst_7 {dimension_numbers = #tpu.dot_dimension_numbers<[1], [0], [0], [1], [0, 0, 1, 1], [], []>} : vector<16x6xf32>, vector<6x4xf32>, vector<16x4xf32> -> vector<16x4xf32>
    %c0_8 = arith.constant 0 : index
    %c0_9 = arith.constant 0 : index
    %11 = vector.load %arg5[%c0_8, %c0_9] : memref<1x4xf32, #tpu.memory_space<vmem>>, vector<1x4xf32>
    %12 = vector.broadcast %11 : vector<1x4xf32> to vector<16x4xf32>
    %13 = arith.addf %10, %12 : vector<16x4xf32>
    %14 = math.tanh %13 : vector<16x4xf32>
    %c0_10 = arith.constant 0 : index
    %c0_11 = arith.constant 0 : index
    %15 = vector.load %arg6[%c0_10, %c0_11] : memref<4x3xf32, #tpu.memory_space<vmem>>, vector<4x3xf32>
    %cst_12 = arith.constant dense<0.000000e+00> : vector<16x3xf32>
    %16 = tpu.matmul %14, %15, %cst_12 {dimension_numbers = #tpu.dot_dimension_numbers<[1], [0], [0], [1], [0, 0, 1, 1], [], []>} : vector<16x4xf32>, vector<4x3xf32>, vector<16x3xf32> -> vector<16x3xf32>
    %c0_13 = arith.constant 0 : index
    %c0_14 = arith.constant 0 : index
    %17 = vector.load %arg7[%c0_13, %c0_14] : memref<1x3xf32, #tpu.memory_space<vmem>>, vector<1x3xf32>
    %18 = vector.broadcast %17 : vector<1x3xf32> to vector<16x3xf32>
    %19 = arith.addf %16, %18 : vector<16x3xf32>
    %20 = math.tanh %19 : vector<16x3xf32>
    %c0_15 = arith.constant 0 : index
    %c0_16 = arith.constant 0 : index
    %21 = vector.load %arg8[%c0_15, %c0_16] : memref<3x1xf32, #tpu.memory_space<vmem>>, vector<3x1xf32>
    %cst_17 = arith.constant dense<0.000000e+00> : vector<16x1xf32>
    %22 = tpu.matmul %20, %21, %cst_17 {dimension_numbers = #tpu.dot_dimension_numbers<[1], [0], [0], [1], [0, 0, 1, 1], [], []>} : vector<16x3xf32>, vector<3x1xf32>, vector<16x1xf32> -> vector<16x1xf32>
    %c0_18 = arith.constant 0 : index
    %c0_19 = arith.constant 0 : index
    %23 = vector.load %arg9[%c0_18, %c0_19] : memref<1x1xf32, #tpu.memory_space<vmem>>, vector<1x1xf32>
    %24 = vector.broadcast %23 : vector<1x1xf32> to vector<16x1xf32>
    %25 = arith.addf %22, %24 : vector<16x1xf32>
    %c0_20 = arith.constant 0 : index
    %c0_21 = arith.constant 0 : index
    %26 = vector.load %arg10[%c0_20, %c0_21] : memref<16x1xf32, #tpu.memory_space<vmem>>, vector<16x1xf32>
    tpu.vector_store %arg10[%c0_20, %c0_21], %25 {strides = array<i32>} : memref<16x1xf32, #tpu.memory_space<vmem>>, vector<16x1xf32>,
    return
  }
  func.func @transform_0(%arg0: i32) -> (i32, i32) {
    %c0_i32 = arith.constant 0 : i32
    %c0_i32_0 = arith.constant 0 : i32
    return %arg0, %c0_i32 : i32, i32
  }
  func.func @transform_1(%arg0: i32) -> (i32, i32) {
    %c0_i32 = arith.constant 0 : i32
    %c0_i32_0 = arith.constant 0 : i32
    %c0_i32_1 = arith.constant 0 : i32
    return %c0_i32, %c0_i32_0 : i32, i32
  }
  func.func @transform_2(%arg0: i32) -> (i32, i32) {
    %c0_i32 = arith.constant 0 : i32
    %c0_i32_0 = arith.constant 0 : i32
    %c0_i32_1 = arith.constant 0 : i32
    return %c0_i32, %c0_i32_0 : i32, i32
  }
  func.func @transform_3(%arg0: i32) -> (i32, i32) {
    %c0_i32 = arith.constant 0 : i32
    %c0_i32_0 = arith.constant 0 : i32
    %c0_i32_1 = arith.constant 0 : i32
    return %c0_i32, %c0_i32_0 : i32, i32
  }
  func.func @transform_4(%arg0: i32) -> (i32, i32) {
    %c0_i32 = arith.constant 0 : i32
    %c0_i32_0 = arith.constant 0 : i32
    %c0_i32_1 = arith.constant 0 : i32
    return %c0_i32, %c0_i32_0 : i32, i32
  }
  func.func @transform_5(%arg0: i32) -> (i32, i32) {
    %c0_i32 = arith.constant 0 : i32
    %c0_i32_0 = arith.constant 0 : i32
    %c0_i32_1 = arith.constant 0 : i32
    return %c0_i32, %c0_i32_0 : i32, i32
  }
  func.func @transform_6(%arg0: i32) -> (i32, i32) {
    %c0_i32 = arith.constant 0 : i32
    %c0_i32_0 = arith.constant 0 : i32
    %c0_i32_1 = arith.constant 0 : i32
    return %c0_i32, %c0_i32_0 : i32, i32
  }
  func.func @transform_7(%arg0: i32) -> (i32, i32) {
    %c0_i32 = arith.constant 0 : i32
    %c0_i32_0 = arith.constant 0 : i32
    %c0_i32_1 = arith.constant 0 : i32
    return %c0_i32, %c0_i32_0 : i32, i32
  }
  func.func @transform_8(%arg0: i32) -> (i32, i32) {
    %c0_i32 = arith.constant 0 : i32
    %c0_i32_0 = arith.constant 0 : i32
    %c0_i32_1 = arith.constant 0 : i32
    return %c0_i32, %c0_i32_0 : i32, i32
  }
  func.func @transform_9(%arg0: i32) -> (i32, i32) {
    %c0_i32 = arith.constant 0 : i32
    %c0_i32_0 = arith.constant 0 : i32
    return %arg0, %c0_i32 : i32, i32
  }
}

</mosaic_0001>

<bundles_post_ra>
// kernel: dropout_net_tanh_forward.1
= control target key start
LH: loop header
LB: loop body
LE: loop exit
PB: predicated region body
PF: predicated region fallthrough
CT: control target
= control target key end

     0   :  { %s3005_s0 = inlined_call_operand.vmem [shape: f32[20,2000], index: 0, kind: input, shape index: {}]   ;;  %s3006_s1 = inlined_call_operand.vmem [shape: f32[2000,6], index: 1, kind: input, shape index: {}]   ;;  %s3007_s2 = inlined_call_operand.vmem [shape: f32[1,6], index: 2, kind: input, shape index: {}]   ;;  %s3008_s3 = inlined_call_operand.vmem [shape: f32[6,4], index: 3, kind: input, shape index: {}]   ;;  %s3009_s4 = inlined_call_operand.vmem [shape: f32[1,4], index: 4, kind: input, shape index: {}]   ;;  %s3010_s5 = inlined_call_operand.vmem [shape: f32[4,3], index: 5, kind: input, shape index: {}]   ;;  %s3011_s6 = inlined_call_operand.vmem [shape: f32[1,3], index: 6, kind: input, shape index: {}]   ;;  %s3012_s7 = inlined_call_operand.vmem [shape: f32[3,1], index: 7, kind: input, shape index: {}]   ;;  %s3013_s8 = inlined_call_operand.<no memory space> [shape: f32[1,1], index: 8, kind: input, shape index: {}]   ;;  %s3014_s9 = inlined_call_operand.vmem [shape: f32[20,1], index: 9, kind: output, shape index: {}]  }
   0x1   :  { %v14_v0 = vstv %s3013_s8 }
   0x2   :  { %15 = vst [vmem:[#allocation2] sm:$0x1] %v14_v0 }
   0x3   :  { %s2102_s11 = smov 0   ;;  %s2104_s12 = smov 0  }
   0x4   :  { %s2106_s13 = smov 0  }
   0x5 LB: > { %s2115_s8 = sadd.s32 4294967295, %s2014_s13   ;;  %s2117_s14 = sadd.s32 1, %s2014_s13   ;;  %s2014_s13 = sphi %s2106_s13, %s3018_s13   ;;  %s2010_s12 = sphi %s2104_s12, %s3017_s12   ;;  %s2006_s11 = sphi %s2102_s11, %s3016_s11  }
   0x6   : > { %s219_s15 = ssub.s32 %s2014_s13, %s2117_s14  ;;  %s222_s16 = sadd.s32 1, %s2010_s12 }
   0x7   : > { %p220_p0 = scmp.eq.s32.totalorder %s219_s15, 0  ;;  %p232_p1 = scmp.ne.s32.totalorder %s2010_s12, %s2006_s11 }
   0x8   : > { %p233_p2 = scmp.eq.s32.totalorder %s2115_s8, 1  ;;  %p1641_p3 = scmp.ge.s32.totalorder %s2014_s13, 1 }
   0x9   : > { %s2125_s17 = scalar_select %p220_p0, %s2010_s12, %s222_s16  }
   0xa   : > { %p2127_p4 = por %p233_p2, %p232_p1  ;;  %p301_p5 = scmp.lt.s32.totalorder %s2014_s13, 3 }
   0xc   : > { %p302_p6 = pnand %p1641_p3, %p301_p5 }
   0xd   : > { %s2177_s15 = sshll.u32 (!%p302_p6), %s2115_s8, 1 }
   0xe   : > { %305 = sbr.rel (%p302_p6) target bundleno = 1046 (0x416), region = 56  ;;  %p348_p7 = scmp.lt.s32.totalorder (!%p302_p6), %s2177_s15, 2 }
  0x13   : > { %v443_v1 = vld [vmem:[%s3006_s1 + $0xf0] sm:$0xff]  ;;  %v444_v2 = vld [vmem:[%s3006_s1 + $0xf8] sm:$0xff]  ;;  %v441_v12 = vld [vmem:[%s3006_s1 + $0xe0] sm:$0xff]  ;;  %s2246_s30 = scalar_select %p348_p7, %s2177_s15, 2  ;;  %vm795_vm0 = vcmask 654336   ;;  %vm1144_vm1 = vcmask 1045504  }
  0x14   : > { %v475_v3 = vld [vmem:[%s3006_s1 + $0x1f0] sm:$0xff]  ;;  %v678_v4 = vpack.c.bf16 %v444_v2, %v443_v1  ;;  %v476_v5 = vld [vmem:[%s3006_s1 + $0x1f8] sm:$0xff]  ;;  %v442_v14 = vld [vmem:[%s3006_s1 + $0xe8] sm:$0xff]  ;;  %vm1137_vm2 = vcmask 48128   ;;  %vm1240_vm3 = vcmask 1043456   ;;  %vm1233_vm4 = vcmask 31744  }
  0x15   : > { %v427_v6 = vld [vmem:[%s3006_s1 + $0x70] sm:$0xff]  ;;  %v428_v7 = vld [vmem:[%s3006_s1 + $0x78] sm:$0xff]  ;;  %v694_v8 = vpack.c.bf16 %v476_v5, %v475_v3  ;;  %v473_v15 = vld [vmem:[%s3006_s1 + $0x1e0] sm:$0xff]  ;;  %v677_v17 = vpack.c.bf16 %v442_v14, %v441_v12  ;;  %s1677_s16 = sshll.u32 %s2246_s30, 7  ;;  %vm1336_vm5 = vcmask 1042432   ;;  %vm1329_vm6 = vcmask 23552  }
  0x16   : > { %v670_v9 = vpack.c.bf16 %v428_v7, %v427_v6  ;;  %v459_v10 = vld [vmem:[%s3006_s1 + $0x170] sm:$0xff]  ;;  %v460_v11 = vld [vmem:[%s3006_s1 + $0x178] sm:$0xff]  ;;  %1681 = vmatprep.subr.bf16.mxu0 %v678_v4  ;;  %v474_v16 = vld [vmem:[%s3006_s1 + $0x1e8] sm:$0xff]  ;;  %s2294_s19 = scalar_lea.vmem %s3005_s0, %s1677_s16  ;;  %s339_s30 = sand.u32 1, %s2006_s11   ;;  %vm1415_vm7 = vcmask 7168  }
  0x17   : > { %v686_v13 = vpack.c.bf16 %v460_v11, %v459_v10  ;;  %1703 = vmatprep.subr.bf16.mxu1 %v694_v8  ;;  %v693_v18 = vpack.c.bf16 %v474_v16, %v473_v15  ;;  %v425_v19 = vld [vmem:[%s3006_s1 + $0x60] sm:$0xff]  ;;  %v426_v20 = vld [vmem:[%s3006_s1 + $0x68] sm:$0xff]  ;;  %v439_v24 = vld [vmem:[%s3006_s1 + $0xd0] sm:$0xff]  ;;  %s1642_s25 = sshll.u32 %s339_s30, 4  ;;  %s1426_s26 = ssub.s32 (%p2127_p4), 3, %s2177_s15 }
  0x18   : > { %1682 = vmatpush3.bf16.msra.mxu0 %v670_v9  ;;  %v457_v21 = vld [vmem:[%s3006_s1 + $0x160] sm:$0xff]  ;;  %v669_v22 = vpack.c.bf16 %v426_v20, %v425_v19  ;;  %v458_v23 = vld [vmem:[%s3006_s1 + $0x168] sm:$0xff]  ;;  %v440_v25 = vld [vmem:[%s3006_s1 + $0xd8] sm:$0xff]  ;;  %s2960_s16 = scalar_lea.vmem [#allocation3], %s1642_s25   ;;  %s1678_s11 = sshll.u32 (%p2127_p4), %s2115_s8, 4 }
  0x19   : > { %1704 = vmatpush3.bf16.msra.mxu1 %v686_v13  ;;  %1683 = vmatprep.subr.bf16.mxu0 %v677_v17  ;;  %v685_v26 = vpack.c.bf16 %v458_v23, %v457_v21  ;;  %v676_v27 = vpack.c.bf16 %v440_v25, %v439_v24  ;;  %v471_v28 = vld [vmem:[%s3006_s1 + $0x1d0] sm:$0xff]  ;;  %v472_v29 = vld [vmem:[%s3006_s1 + $0x1d8] sm:$0xff]  ;;  %v437_v36 = vld [vmem:[%s3006_s1 + $0xc0] sm:$0xff]  ;;  %p1427_p8 = scmp.lt.s32.totalorder (%p2127_p4), %s1426_s26, 2  ;;  %s2971_s28 = scalar_lea.vmem (%p2127_p4), %s3014_s9, %s1678_s11  }
  0x1a   : > { %1705 = vmatprep.subr.bf16.mxu1 %v693_v18  ;;  %v423_v30 = vld [vmem:[%s3006_s1 + $0x50] sm:$0xff]  ;;  %v692_v31 = vpack.c.bf16 %v472_v29, %v471_v28  ;;  %v424_v32 = vld [vmem:[%s3006_s1 + $0x58] sm:$0xff]  ;;  %v438_v37 = vld [vmem:[%s3006_s1 + $0xc8] sm:$0xff] }
  0x1b   : > { %v455_v33 = vld [vmem:[%s3006_s1 + $0x150] sm:$0xff]  ;;  %v456_v34 = vld [vmem:[%s3006_s1 + $0x158] sm:$0xff]  ;;  %v668_v35 = vpack.c.bf16 %v424_v32, %v423_v30  ;;  %v469_v38 = vld [vmem:[%s3006_s1 + $0x1c0] sm:$0xff]  ;;  %v675_v40 = vpack.c.bf16 %v438_v37, %v437_v36 }
  0x1c   : > { %1684 = vmatpush3.bf16.msra.mxu0 %v669_v22  ;;  %v684_v39 = vpack.c.bf16 %v456_v34, %v455_v33  ;;  %v470_v41 = vld [vmem:[%s3006_s1 + $0x1c8] sm:$0xff]  ;;  %v421_v42 = vld [vmem:[%s3006_s1 + $0x40] sm:$0xff]  ;;  %v435_v47 = vld [vmem:[%s3006_s1 + $0xb0] sm:$0xff] }
  0x1d   : > { %1706 = vmatpush3.bf16.msra.mxu1 %v685_v26  ;;  %1685 = vmatprep.subr.bf16.mxu0 %v676_v27  ;;  %v422_v43 = vld [vmem:[%s3006_s1 + $0x48] sm:$0xff]  ;;  %v691_v44 = vpack.c.bf16 %v470_v41, %v469_v38  ;;  %v453_v45 = vld [vmem:[%s3006_s1 + $0x140] sm:$0xff]  ;;  %v436_v48 = vld [vmem:[%s3006_s1 + $0xb8] sm:$0xff] }
  0x1e   : > { %1707 = vmatprep.subr.bf16.mxu1 %v692_v31  ;;  %v454_v46 = vld [vmem:[%s3006_s1 + $0x148] sm:$0xff]  ;;  %v467_v49 = vld [vmem:[%s3006_s1 + $0x1b0] sm:$0xff]  ;;  %v468_v50 = vld [vmem:[%s3006_s1 + $0x1b8] sm:$0xff]  ;;  %v667_v51 = vpack.c.bf16 %v422_v43, %v421_v42  ;;  %v674_v53 = vpack.c.bf16 %v436_v48, %v435_v47 }
  0x1f   : > { %v683_v52 = vpack.c.bf16 %v454_v46, %v453_v45  ;;  %v419_v54 = vld [vmem:[%s3006_s1 + $0x30] sm:$0xff]  ;;  %v420_v55 = vld [vmem:[%s3006_s1 + $0x38] sm:$0xff]  ;;  %v690_v57 = vpack.c.bf16 %v468_v50, %v467_v49  ;;  %v433_v59 = vld [vmem:[%s3006_s1 + $0xa0] sm:$0xff] }
  0x20   : > { %1686 = vmatpush3.bf16.msra.mxu0 %v668_v35  ;;  %v451_v56 = vld [vmem:[%s3006_s1 + $0x130] sm:$0xff]  ;;  %v452_v58 = vld [vmem:[%s3006_s1 + $0x138] sm:$0xff]  ;;  %v434_v60 = vld [vmem:[%s3006_s1 + $0xa8] sm:$0xff]  ;;  %v666_v63 = vpack.c.bf16 %v420_v55, %v419_v54 }
  0x21   : > { %1708 = vmatpush3.bf16.msra.mxu1 %v684_v39  ;;  %1687 = vmatprep.subr.bf16.mxu0 %v675_v40  ;;  %v465_v61 = vld [vmem:[%s3006_s1 + $0x1a0] sm:$0xff]  ;;  %v466_v62 = vld [vmem:[%s3006_s1 + $0x1a8] sm:$0xff]  ;;  %v682_v0 = vpack.c.bf16 %v452_v58, %v451_v56  ;;  %v673_v1 = vpack.c.bf16 %v434_v60, %v433_v59  ;;  %v431_v7 = vld [vmem:[%s3006_s1 + $0x90] sm:$0xff] }
  0x22   : > { %1709 = vmatprep.subr.bf16.mxu1 %v691_v44  ;;  %v417_v2 = vld [vmem:[%s3006_s1 + $0x20] sm:$0xff]  ;;  %v418_v3 = vld [vmem:[%s3006_s1 + $0x28] sm:$0xff]  ;;  %v689_v5 = vpack.c.bf16 %v466_v62, %v465_v61  ;;  %v432_v8 = vld [vmem:[%s3006_s1 + $0x98] sm:$0xff] }
  0x23   : > { %v449_v4 = vld [vmem:[%s3006_s1 + $0x120] sm:$0xff]  ;;  %v450_v6 = vld [vmem:[%s3006_s1 + $0x128] sm:$0xff]  ;;  %v463_v9 = vld [vmem:[%s3006_s1 + $0x190] sm:$0xff]  ;;  %v665_v12 = vpack.c.bf16 %v418_v3, %v417_v2  ;;  %v672_v17 = vpack.c.bf16 %v432_v8, %v431_v7 }
  0x24   : > { %1688 = vmatpush3.bf16.msra.mxu0 %v667_v51  ;;  %v464_v10 = vld [vmem:[%s3006_s1 + $0x198] sm:$0xff]  ;;  %v415_v11 = vld [vmem:[%s3006_s1 + $0x10] sm:$0xff]  ;;  %v681_v16 = vpack.c.bf16 %v450_v6, %v449_v4  ;;  %v429_v18 = vld [vmem:[%s3006_s1 + $0x80] sm:$0xff] }
  0x25   : > { %1710 = vmatpush3.bf16.msra.mxu1 %v683_v52  ;;  %1689 = vmatprep.subr.bf16.mxu0 %v674_v53  ;;  %v416_v13 = vld [vmem:[%s3006_s1 + $0x18] sm:$0xff]  ;;  %v447_v14 = vld [vmem:[%s3006_s1 + $0x110] sm:$0xff]  ;;  %v366_v19 = vld [vmem:[%s2294_s19 + $0x8] sm:$0xff]  ;;  %v688_v21 = vpack.c.bf16 %v464_v10, %v463_v9 }
  0x26   : > { %1711 = vmatprep.subr.bf16.mxu1 %v690_v57  ;;  %v448_v15 = vld [vmem:[%s3006_s1 + $0x118] sm:$0xff]  ;;  %v382_v20 = vld [vmem:[%s2294_s19 + $0x88] sm:$0xff]  ;;  %v461_v26 = vld [vmem:[%s3006_s1 + $0x180] sm:$0xff]  ;;  %v664_v29 = vpack.c.bf16 %v416_v13, %v415_v11 }
  0x27   : > { %v430_v22 = vld [vmem:[%s3006_s1 + $0x88] sm:$0xff]  ;;  %v398_v23 = vpack.c.bf16 %v382_v20, %v366_v19  ;;  %v368_v24 = vld [vmem:[%s2294_s19 + $0x18] sm:$0xff]  ;;  %v680_v30 = vpack.c.bf16 %v448_v15, %v447_v14  ;;  %v413_v32 = vld [vmem:[%s3006_s1] sm:$0xff] }
  0x28   : > { %1690 = vmatpush3.bf16.msra.mxu0 %v666_v63  ;;  %v384_v25 = vld [vmem:[%s2294_s19 + $0x98] sm:$0xff]  ;;  %v462_v27 = vld [vmem:[%s3006_s1 + $0x188] sm:$0xff]  ;;  %v671_v31 = vpack.c.bf16 %v430_v22, %v429_v18  ;;  %v445_v34 = vld [vmem:[%s3006_s1 + $0x100] sm:$0xff] }
  0x29   : > { %1712 = vmatpush3.bf16.msra.mxu1 %v682_v0  ;;  %1691 = vmatprep.subr.bf16.mxu0 %v673_v1  ;;  %v400_v28 = vpack.c.bf16 %v384_v25, %v368_v24  ;;  %v414_v33 = vld [vmem:[%s3006_s1 + $0x8] sm:$0xff]  ;;  %v687_v35 = vpack.c.bf16 %v462_v27, %v461_v26  ;;  %v507_v37 = vld [vmem:[%s3006_s1 + $0x2f0] sm:$0xff]  ;;  %v508_v38 = vld [vmem:[%s3006_s1 + $0x2f8] sm:$0xff] }
  0x2a   : > { %1713 = vmatprep.subr.bf16.mxu1 %v689_v5  ;;  %831 = vmatprep.mubr.bf16.mxu0 %v398_v23  ;;  %v446_v36 = vld [vmem:[%s3006_s1 + $0x108] sm:$0xff]  ;;  %v365_v39 = vld [vmem:[%s2294_s19] sm:$0xff]  ;;  %v539_v40 = vld [vmem:[%s3006_s1 + $0x3f0] sm:$0xff]  ;;  %v663_v42 = vpack.c.bf16 %v414_v33, %v413_v32  ;;  %v710_v47 = vpack.c.bf16 %v508_v38, %v507_v37 }
  0x2b   : > { %872 = vmatprep.mubr.bf16.mxu1 %v400_v28  ;;  %v540_v41 = vld [vmem:[%s3006_s1 + $0x3f8] sm:$0xff]  ;;  %v381_v43 = vld [vmem:[%s2294_s19 + $0x80] sm:$0xff]  ;;  %v367_v44 = vld [vmem:[%s2294_s19 + $0x10] sm:$0xff]  ;;  %v679_v46 = vpack.c.bf16 %v446_v36, %v445_v34 }
  0x2c   : > { %1692 = vmatpush3.bf16.msra.mxu0 %v665_v12  ;;  %v383_v45 = vld [vmem:[%s2294_s19 + $0x90] sm:$0xff]  ;;  %v492_v49 = vld [vmem:[%s3006_s1 + $0x278] sm:$0xff]  ;;  %v726_v51 = vpack.c.bf16 %v540_v41, %v539_v40  ;;  %v505_v53 = vld [vmem:[%s3006_s1 + $0x2e0] sm:$0xff]  ;;  %v397_v55 = vpack.c.bf16 %v381_v43, %v365_v39 }
  0x2d   : > { %1714 = vmatpush3.bf16.msra.mxu1 %v681_v16  ;;  %1693 = vmatprep.subr.bf16.mxu0 %v672_v17  ;;  %v491_v48 = vld [vmem:[%s3006_s1 + $0x270] sm:$0xff]  ;;  %v524_v52 = vld [vmem:[%s3006_s1 + $0x378] sm:$0xff]  ;;  %v506_v54 = vld [vmem:[%s3006_s1 + $0x2e8] sm:$0xff]  ;;  %v399_v58 = vpack.c.bf16 %v383_v45, %v367_v44 }
  0x2e   : > { %1715 = vmatprep.subr.bf16.mxu1 %v688_v21  ;;  %v523_v50 = vld [vmem:[%s3006_s1 + $0x370] sm:$0xff]  ;;  %v537_v56 = vld [vmem:[%s3006_s1 + $0x3e0] sm:$0xff]  ;;  %v538_v57 = vld [vmem:[%s3006_s1 + $0x3e8] sm:$0xff]  ;;  %v702_v59 = vpack.c.bf16 %v492_v49, %v491_v48  ;;  %v709_v61 = vpack.c.bf16 %v506_v54, %v505_v53 }
  0x2f   : > { %v718_v60 = vpack.c.bf16 %v524_v52, %v523_v50  ;;  %v489_v62 = vld [vmem:[%s3006_s1 + $0x260] sm:$0xff]  ;;  %v490_v63 = vld [vmem:[%s3006_s1 + $0x268] sm:$0xff]  ;;  %v725_v1 = vpack.c.bf16 %v538_v57, %v537_v56  ;;  %v503_v3 = vld [vmem:[%s3006_s1 + $0x2d0] sm:$0xff] }
  0x30   : > { %1694 = vmatpush3.bf16.msra.mxu0 %v664_v29  ;;  %v521_v0 = vld [vmem:[%s3006_s1 + $0x360] sm:$0xff]  ;;  %v522_v2 = vld [vmem:[%s3006_s1 + $0x368] sm:$0xff]  ;;  %v504_v4 = vld [vmem:[%s3006_s1 + $0x2d8] sm:$0xff]  ;;  %v701_v7 = vpack.c.bf16 %v490_v63, %v489_v62 }
  0x31   : > { %1716 = vmatpush3.bf16.msra.mxu1 %v680_v30  ;;  %1695 = vmatprep.subr.bf16.mxu0 %v671_v31  ;;  %v535_v5 = vld [vmem:[%s3006_s1 + $0x3d0] sm:$0xff]  ;;  %v536_v6 = vld [vmem:[%s3006_s1 + $0x3d8] sm:$0xff]  ;;  %v717_v8 = vpack.c.bf16 %v522_v2, %v521_v0  ;;  %v708_v9 = vpack.c.bf16 %v504_v4, %v503_v3  ;;  %v501_v15 = vld [vmem:[%s3006_s1 + $0x2c0] sm:$0xff] }
  0x32   : > { %1717 = vmatprep.subr.bf16.mxu1 %v687_v35  ;;  %v487_v10 = vld [vmem:[%s3006_s1 + $0x250] sm:$0xff]  ;;  %v488_v11 = vld [vmem:[%s3006_s1 + $0x258] sm:$0xff]  ;;  %v724_v13 = vpack.c.bf16 %v536_v6, %v535_v5  ;;  %v502_v16 = vld [vmem:[%s3006_s1 + $0x2c8] sm:$0xff] }
  0x33   : > { %v519_v12 = vld [vmem:[%s3006_s1 + $0x350] sm:$0xff]  ;;  %v520_v14 = vld [vmem:[%s3006_s1 + $0x358] sm:$0xff]  ;;  %v533_v17 = vld [vmem:[%s3006_s1 + $0x3c0] sm:$0xff]  ;;  %v700_v19 = vpack.c.bf16 %v488_v11, %v487_v10  ;;  %v707_v21 = vpack.c.bf16 %v502_v16, %v501_v15 }
  0x34   : > { %1696 = vmatpush3.bf16.msra.mxu0 %v663_v42  ;;  %v534_v18 = vld [vmem:[%s3006_s1 + $0x3c8] sm:$0xff]  ;;  %v716_v20 = vpack.c.bf16 %v520_v14, %v519_v12  ;;  %v485_v22 = vld [vmem:[%s3006_s1 + $0x240] sm:$0xff]  ;;  %v499_v27 = vld [vmem:[%s3006_s1 + $0x2b0] sm:$0xff] }
  0x35   : > { %1718 = vmatpush3.bf16.msra.mxu1 %v679_v46  ;;  %1725 = vmatprep.subr.bf16.mxu0 %v710_v47  ;;  %v486_v23 = vld [vmem:[%s3006_s1 + $0x248] sm:$0xff]  ;;  %v517_v24 = vld [vmem:[%s3006_s1 + $0x340] sm:$0xff]  ;;  %v723_v25 = vpack.c.bf16 %v534_v18, %v533_v17  ;;  %v500_v28 = vld [vmem:[%s3006_s1 + $0x2b8] sm:$0xff] }
  0x36   : > { %1747 = vmatprep.subr.bf16.mxu1 %v726_v51  ;;  %v518_v26 = vld [vmem:[%s3006_s1 + $0x348] sm:$0xff]  ;;  %v531_v29 = vld [vmem:[%s3006_s1 + $0x3b0] sm:$0xff]  ;;  %v532_v30 = vld [vmem:[%s3006_s1 + $0x3b8] sm:$0xff]  ;;  %v699_v32 = vpack.c.bf16 %v486_v23, %v485_v22  ;;  %v706_v37 = vpack.c.bf16 %v500_v28, %v499_v27 }
  0x37   : > { %832 = vmatmul.mubr.bf16.vlgmr.msra.gmra.mxu0 %v397_v55  ;;  %v483_v31 = vld [vmem:[%s3006_s1 + $0x230] sm:$0xff]  ;;  %v484_v33 = vld [vmem:[%s3006_s1 + $0x238] sm:$0xff]  ;;  %v715_v36 = vpack.c.bf16 %v518_v26, %v517_v24  ;;  %v497_v38 = vld [vmem:[%s3006_s1 + $0x2a0] sm:$0xff]  ;;  %v722_v41 = vpack.c.bf16 %v532_v30, %v531_v29 }
  0x38   : > { %873 = vmatmul.mubr.bf16.vlgmr.msra.gmra.mxu1 %v399_v58  ;;  %1726 = vmatpush3.bf16.msra.mxu0 %v702_v59  ;;  %v515_v34 = vld [vmem:[%s3006_s1 + $0x330] sm:$0xff]  ;;  %v516_v35 = vld [vmem:[%s3006_s1 + $0x338] sm:$0xff]  ;;  %v370_v39 = vld [vmem:[%s2294_s19 + $0x28] sm:$0xff]  ;;  %v698_v49 = vpack.c.bf16 %v484_v33, %v483_v31 }
  0x39   : > { %1748 = vmatpush3.bf16.msra.mxu1 %v718_v60  ;;  %1727 = vmatprep.subr.bf16.mxu0 %v709_v61  ;;  %v386_v40 = vld [vmem:[%s2294_s19 + $0xa8] sm:$0xff]  ;;  %v372_v44 = vld [vmem:[%s2294_s19 + $0x38] sm:$0xff]  ;;  %v529_v46 = vld [vmem:[%s3006_s1 + $0x3a0] sm:$0xff]  ;;  %v714_v50 = vpack.c.bf16 %v516_v35, %v515_v34 }
  0x3a   : > { %1749 = vmatprep.subr.bf16.mxu1 %v725_v1  ;;  %v498_v42 = vld [vmem:[%s3006_s1 + $0x2a8] sm:$0xff]  ;;  %v402_v43 = vpack.c.bf16 %v386_v40, %v370_v39  ;;  %v388_v45 = vld [vmem:[%s2294_s19 + $0xb8] sm:$0xff]  ;;  %v481_v52 = vld [vmem:[%s3006_s1 + $0x220] sm:$0xff] }
  0x3b   : > { %v530_v47 = vld [vmem:[%s3006_s1 + $0x3a8] sm:$0xff]  ;;  %v404_v48 = vpack.c.bf16 %v388_v45, %v372_v44  ;;  %v705_v51 = vpack.c.bf16 %v498_v42, %v497_v38  ;;  %v513_v54 = vld [vmem:[%s3006_s1 + $0x320] sm:$0xff]  ;;  %v495_v57 = vld [vmem:[%s3006_s1 + $0x290] sm:$0xff] }
  0x3c   : > { %1728 = vmatpush3.bf16.msra.mxu0 %v701_v7  ;;  %913 = vmatprep.mubr.bf16.mxu0 %v402_v43  ;;  %v482_v53 = vld [vmem:[%s3006_s1 + $0x228] sm:$0xff]  ;;  %v721_v55 = vpack.c.bf16 %v530_v47, %v529_v46  ;;  %v496_v58 = vld [vmem:[%s3006_s1 + $0x298] sm:$0xff]  ;;  %v527_v59 = vld [vmem:[%s3006_s1 + $0x390] sm:$0xff] }
  0x3d   : > { %1750 = vmatpush3.bf16.msra.mxu1 %v717_v8  ;;  %1729 = vmatprep.subr.bf16.mxu0 %v708_v9  ;;  %v514_v56 = vld [vmem:[%s3006_s1 + $0x328] sm:$0xff]  ;;  %v528_v60 = vld [vmem:[%s3006_s1 + $0x398] sm:$0xff]  ;;  %v697_v61 = vpack.c.bf16 %v482_v53, %v481_v52  ;;  %v704_v63 = vpack.c.bf16 %v496_v58, %v495_v57  ;;  %v479_v0 = vld [vmem:[%s3006_s1 + $0x210] sm:$0xff] }
  0x3e   : > { %1751 = vmatprep.subr.bf16.mxu1 %v724_v13  ;;  %954 = vmatprep.mubr.bf16.mxu1 %v404_v48  ;;  %v713_v62 = vpack.c.bf16 %v514_v56, %v513_v54  ;;  %v480_v1 = vld [vmem:[%s3006_s1 + $0x218] sm:$0xff]  ;;  %v511_v2 = vld [vmem:[%s3006_s1 + $0x310] sm:$0xff]  ;;  %v720_v3 = vpack.c.bf16 %v528_v60, %v527_v59  ;;  %v493_v5 = vld [vmem:[%s3006_s1 + $0x280] sm:$0xff] }
  0x3f   : > { %v512_v4 = vld [vmem:[%s3006_s1 + $0x318] sm:$0xff]  ;;  %v494_v6 = vld [vmem:[%s3006_s1 + $0x288] sm:$0xff]  ;;  %v525_v7 = vld [vmem:[%s3006_s1 + $0x380] sm:$0xff]  ;;  %v696_v9 = vpack.c.bf16 %v480_v1, %v479_v0 }
  0x40   : > { %1730 = vmatpush3.bf16.msra.mxu0 %v700_v19  ;;  %v526_v8 = vld [vmem:[%s3006_s1 + $0x388] sm:$0xff]  ;;  %v712_v10 = vpack.c.bf16 %v512_v4, %v511_v2  ;;  %v703_v11 = vpack.c.bf16 %v494_v6, %v493_v5  ;;  %v477_v12 = vld [vmem:[%s3006_s1 + $0x200] sm:$0xff]  ;;  %v571_v17 = vld [vmem:[%s3006_s1 + $0x4f0] sm:$0xff] }
  0x41   : > { %1752 = vmatpush3.bf16.msra.mxu1 %v716_v20  ;;  %1731 = vmatprep.subr.bf16.mxu0 %v707_v21  ;;  %v478_v13 = vld [vmem:[%s3006_s1 + $0x208] sm:$0xff]  ;;  %v509_v14 = vld [vmem:[%s3006_s1 + $0x300] sm:$0xff]  ;;  %v719_v15 = vpack.c.bf16 %v526_v8, %v525_v7  ;;  %v572_v18 = vld [vmem:[%s3006_s1 + $0x4f8] sm:$0xff] }
  0x42   : > { %1753 = vmatprep.subr.bf16.mxu1 %v723_v25  ;;  %v510_v16 = vld [vmem:[%s3006_s1 + $0x308] sm:$0xff]  ;;  %v369_v19 = vld [vmem:[%s2294_s19 + $0x20] sm:$0xff]  ;;  %v603_v20 = vld [vmem:[%s3006_s1 + $0x5f0] sm:$0xff]  ;;  %v695_v22 = vpack.c.bf16 %v478_v13, %v477_v12  ;;  %v742_v27 = vpack.c.bf16 %v572_v18, %v571_v17 }
  0x43   : > { %v604_v21 = vld [vmem:[%s3006_s1 + $0x5f8] sm:$0xff]  ;;  %v385_v23 = vld [vmem:[%s2294_s19 + $0xa0] sm:$0xff]  ;;  %v371_v24 = vld [vmem:[%s2294_s19 + $0x30] sm:$0xff]  ;;  %v711_v26 = vpack.c.bf16 %v510_v16, %v509_v14 }
  0x44   : > { %1732 = vmatpush3.bf16.msra.mxu0 %v699_v32  ;;  %v387_v25 = vld [vmem:[%s2294_s19 + $0xb0] sm:$0xff]  ;;  %v556_v29 = vld [vmem:[%s3006_s1 + $0x478] sm:$0xff]  ;;  %v758_v31 = vpack.c.bf16 %v604_v21, %v603_v20  ;;  %v569_v33 = vld [vmem:[%s3006_s1 + $0x4e0] sm:$0xff]  ;;  %v401_v35 = vpack.c.bf16 %v385_v23, %v369_v19 }
  0x45   : > { %1754 = vmatpush3.bf16.msra.mxu1 %v715_v36  ;;  %1733 = vmatprep.subr.bf16.mxu0 %v706_v37  ;;  %v555_v28 = vld [vmem:[%s3006_s1 + $0x470] sm:$0xff]  ;;  %v588_v32 = vld [vmem:[%s3006_s1 + $0x578] sm:$0xff]  ;;  %v570_v34 = vld [vmem:[%s3006_s1 + $0x4e8] sm:$0xff]  ;;  %v403_v38 = vpack.c.bf16 %v387_v25, %v371_v24 }
  0x46   : > { %1755 = vmatprep.subr.bf16.mxu1 %v722_v41  ;;  %v587_v30 = vld [vmem:[%s3006_s1 + $0x570] sm:$0xff]  ;;  %v601_v36 = vld [vmem:[%s3006_s1 + $0x5e0] sm:$0xff]  ;;  %v602_v37 = vld [vmem:[%s3006_s1 + $0x5e8] sm:$0xff]  ;;  %v734_v39 = vpack.c.bf16 %v556_v29, %v555_v28  ;;  %v741_v41 = vpack.c.bf16 %v570_v34, %v569_v33 }
  0x47   : > { %v750_v40 = vpack.c.bf16 %v588_v32, %v587_v30  ;;  %v553_v42 = vld [vmem:[%s3006_s1 + $0x460] sm:$0xff]  ;;  %v554_v43 = vld [vmem:[%s3006_s1 + $0x468] sm:$0xff]  ;;  %v757_v45 = vpack.c.bf16 %v602_v37, %v601_v36  ;;  %v567_v47 = vld [vmem:[%s3006_s1 + $0x4d0] sm:$0xff] }
  0x48   : > { %1734 = vmatpush3.bf16.msra.mxu0 %v698_v49  ;;  %v585_v44 = vld [vmem:[%s3006_s1 + $0x560] sm:$0xff]  ;;  %v586_v46 = vld [vmem:[%s3006_s1 + $0x568] sm:$0xff]  ;;  %v568_v48 = vld [vmem:[%s3006_s1 + $0x4d8] sm:$0xff]  ;;  %v733_v52 = vpack.c.bf16 %v554_v43, %v553_v42 }
  0x49   : > { %1756 = vmatpush3.bf16.msra.mxu1 %v714_v50  ;;  %1735 = vmatprep.subr.bf16.mxu0 %v705_v51  ;;  %v599_v49 = vld [vmem:[%s3006_s1 + $0x5d0] sm:$0xff]  ;;  %v600_v50 = vld [vmem:[%s3006_s1 + $0x5d8] sm:$0xff]  ;;  %v749_v56 = vpack.c.bf16 %v586_v46, %v585_v44  ;;  %v740_v57 = vpack.c.bf16 %v568_v48, %v567_v47  ;;  %v565_v58 = vld [vmem:[%s3006_s1 + $0x4c0] sm:$0xff] }
  0x4a   : > { %1757 = vmatprep.subr.bf16.mxu1 %v721_v55  ;;  %v551_v51 = vld [vmem:[%s3006_s1 + $0x450] sm:$0xff]  ;;  %v552_v53 = vld [vmem:[%s3006_s1 + $0x458] sm:$0xff]  ;;  %v374_v59 = vld [vmem:[%s2294_s19 + $0x48] sm:$0xff] }
  0x4b   : > { %v583_v54 = vld [vmem:[%s3006_s1 + $0x550] sm:$0xff]  ;;  %v584_v55 = vld [vmem:[%s3006_s1 + $0x558] sm:$0xff]  ;;  %v390_v60 = vld [vmem:[%s2294_s19 + $0xc8] sm:$0xff]  ;;  %v732_v5 = vpack.c.bf16 %v552_v53, %v551_v51 }
  0x4c   : > { %1736 = vmatpush3.bf16.msra.mxu0 %v697_v61  ;;  %v756_v61 = vpack.c.bf16 %v600_v50, %v599_v49  ;;  %v376_v0 = vld [vmem:[%s2294_s19 + $0x58] sm:$0xff]  ;;  %v597_v2 = vld [vmem:[%s3006_s1 + $0x5c0] sm:$0xff]  ;;  %v748_v6 = vpack.c.bf16 %v584_v55, %v583_v54  ;;  %v582_v12 = vld [vmem:[%s3006_s1 + $0x548] sm:$0xff] }
  0x4d   : > { %1758 = vmatpush3.bf16.msra.mxu1 %v713_v62  ;;  %1737 = vmatprep.subr.bf16.mxu0 %v704_v63  ;;  %v566_v62 = vld [vmem:[%s3006_s1 + $0x4c8] sm:$0xff]  ;;  %v406_v63 = vpack.c.bf16 %v390_v60, %v374_v59  ;;  %v392_v1 = vld [vmem:[%s2294_s19 + $0xd8] sm:$0xff]  ;;  %v549_v8 = vld [vmem:[%s3006_s1 + $0x440] sm:$0xff] }
  0x4e   : > { %1759 = vmatprep.subr.bf16.mxu1 %v720_v3  ;;  %v598_v3 = vld [vmem:[%s3006_s1 + $0x5c8] sm:$0xff]  ;;  %v408_v4 = vpack.c.bf16 %v392_v1, %v376_v0  ;;  %v739_v7 = vpack.c.bf16 %v566_v62, %v565_v58  ;;  %v563_v13 = vld [vmem:[%s3006_s1 + $0x4b0] sm:$0xff]  ;;  %v564_v14 = vld [vmem:[%s3006_s1 + $0x4b8] sm:$0xff] }
  0x4f   : > { %v596_v16 = vld [vmem:[%s3006_s1 + $0x5b8] sm:$0xff]  ;;  %v738_v19 = vpack.c.bf16 %v564_v14, %v563_v13  ;;  %v547_v20 = vld [vmem:[%s3006_s1 + $0x430] sm:$0xff]  ;;  %v561_v25 = vld [vmem:[%s3006_s1 + $0x4a0] sm:$0xff] }
  0x50   : > { %1738 = vmatpush3.bf16.msra.mxu0 %v696_v9  ;;  %v550_v9 = vld [vmem:[%s3006_s1 + $0x448] sm:$0xff]  ;;  %v548_v21 = vld [vmem:[%s3006_s1 + $0x438] sm:$0xff]  ;;  %v545_v32 = vld [vmem:[%s3006_s1 + $0x420] sm:$0xff] }
  0x51   : > { %1760 = vmatpush3.bf16.msra.mxu1 %v712_v10  ;;  %1739 = vmatprep.subr.bf16.mxu0 %v703_v11  ;;  %v581_v10 = vld [vmem:[%s3006_s1 + $0x540] sm:$0xff]  ;;  %v755_v11 = vpack.c.bf16 %v598_v3, %v597_v2  ;;  %v731_v17 = vpack.c.bf16 %v550_v9, %v549_v8  ;;  %v580_v24 = vld [vmem:[%s3006_s1 + $0x538] sm:$0xff]  ;;  %v594_v28 = vld [vmem:[%s3006_s1 + $0x5a8] sm:$0xff]  ;;  %v730_v29 = vpack.c.bf16 %v548_v21, %v547_v20 }
  0x52   : > { %1761 = vmatprep.subr.bf16.mxu1 %v719_v15  ;;  %v595_v15 = vld [vmem:[%s3006_s1 + $0x5b0] sm:$0xff]  ;;  %v747_v18 = vpack.c.bf16 %v582_v12, %v581_v10  ;;  %v546_v33 = vld [vmem:[%s3006_s1 + $0x428] sm:$0xff]  ;;  %v577_v34 = vld [vmem:[%s3006_s1 + $0x520] sm:$0xff] }
  0x53   : > { %v754_v23 = vpack.c.bf16 %v596_v16, %v595_v15  ;;  %v578_v36 = vld [vmem:[%s3006_s1 + $0x528] sm:$0xff]  ;;  %v559_v37 = vld [vmem:[%s3006_s1 + $0x490] sm:$0xff]  ;;  %v576_v48 = vld [vmem:[%s3006_s1 + $0x518] sm:$0xff] }
  0x54   : > { %1740 = vmatpush3.bf16.msra.mxu0 %v695_v22  ;;  %v579_v22 = vld [vmem:[%s3006_s1 + $0x530] sm:$0xff]  ;;  %v745_v42 = vpack.c.bf16 %v578_v36, %v577_v34  ;;  %v557_v49 = vld [vmem:[%s3006_s1 + $0x480] sm:$0xff]  ;;  %v558_v50 = vld [vmem:[%s3006_s1 + $0x488] sm:$0xff] }
  0x55   : > { %1762 = vmatpush3.bf16.msra.mxu1 %v711_v26  ;;  %1769 = vmatprep.subr.bf16.mxu0 %v742_v27  ;;  %v562_v26 = vld [vmem:[%s3006_s1 + $0x4a8] sm:$0xff]  ;;  %v593_v27 = vld [vmem:[%s3006_s1 + $0x5a0] sm:$0xff]  ;;  %v746_v30 = vpack.c.bf16 %v580_v24, %v579_v22  ;;  %v543_v44 = vld [vmem:[%s3006_s1 + $0x410] sm:$0xff]  ;;  %v735_v55 = vpack.c.bf16 %v558_v50, %v557_v49  ;;  %v2048_v24 = vmov 0  }
  0x56   : > { %1791 = vmatprep.subr.bf16.mxu1 %v758_v31  ;;  %v737_v31 = vpack.c.bf16 %v562_v26, %v561_v25  ;;  %v575_v46 = vld [vmem:[%s3006_s1 + $0x510] sm:$0xff]  ;;  %v589_v51 = vld [vmem:[%s3006_s1 + $0x580] sm:$0xff]  ;;  %v574_v60 = vld [vmem:[%s3006_s1 + $0x508] sm:$0xff] }
  0x57   : > { %914 = vmatmul.mubr.bf16.vlgmr.msra.gmra.mxu0 %v401_v35  ;;  %v753_v35 = vpack.c.bf16 %v594_v28, %v593_v27  ;;  %v744_v54 = vpack.c.bf16 %v576_v48, %v575_v46  ;;  %v573_v58 = vld [vmem:[%s3006_s1 + $0x500] sm:$0xff]  ;;  %v636_v62 = vld [vmem:[%s3006_s1 + $0x6f8] sm:$0xff]  ;;  %v375_v2 = vld [vmem:[%s2294_s19 + $0x50] sm:$0xff] }
  0x58   : > { %955 = vmatmul.mubr.bf16.vlgmr.msra.gmra.mxu1 %v403_v38  ;;  %1770 = vmatpush3.bf16.msra.mxu0 %v734_v39  ;;  %v560_v38 = vld [vmem:[%s3006_s1 + $0x498] sm:$0xff]  ;;  %v591_v39 = vld [vmem:[%s3006_s1 + $0x590] sm:$0xff]  ;;  %v389_v1 = vld [vmem:[%s2294_s19 + $0xc0] sm:$0xff] }
  0x59   : > { %1792 = vmatpush3.bf16.msra.mxu1 %v750_v40  ;;  %1771 = vmatprep.subr.bf16.mxu0 %v741_v41  ;;  %v592_v40 = vld [vmem:[%s3006_s1 + $0x598] sm:$0xff]  ;;  %v729_v41 = vpack.c.bf16 %v546_v33, %v545_v32  ;;  %v736_v43 = vpack.c.bf16 %v560_v38, %v559_v37  ;;  %v391_v3 = vld [vmem:[%s2294_s19 + $0xd0] sm:$0xff]  ;;  %v633_v10 = vld [vmem:[%s3006_s1 + $0x6e0] sm:$0xff] }
  0x5a   : > { %1793 = vmatprep.subr.bf16.mxu1 %v757_v45  ;;  %995 = vmatprep.mubr.bf16.mxu0 %v406_v63  ;;  %v544_v45 = vld [vmem:[%s3006_s1 + $0x418] sm:$0xff]  ;;  %v752_v47 = vpack.c.bf16 %v592_v40, %v591_v39  ;;  %v373_v63 = vld [vmem:[%s2294_s19 + $0x40] sm:$0xff]  ;;  %v651_v8 = vld [vmem:[%s3006_s1 + $0x770] sm:$0xff]  ;;  %v407_v15 = vpack.c.bf16 %v391_v3, %v375_v2 }
  0x5b   : > { %1036 = vmatprep.mubr.bf16.mxu1 %v408_v4  ;;  %v728_v53 = vpack.c.bf16 %v544_v45, %v543_v44  ;;  %v743_v4 = vpack.c.bf16 %v574_v60, %v573_v58  ;;  %v652_v9 = vld [vmem:[%s3006_s1 + $0x778] sm:$0xff]  ;;  %v405_v12 = vpack.c.bf16 %v389_v1, %v373_v63  ;;  %v378_v13 = vld [vmem:[%s2294_s19 + $0x68] sm:$0xff]  ;;  %v617_v21 = vld [vmem:[%s3006_s1 + $0x660] sm:$0xff] }
  0x5c   : > { %1772 = vmatpush3.bf16.msra.mxu0 %v733_v52  ;;  %v590_v52 = vld [vmem:[%s3006_s1 + $0x588] sm:$0xff]  ;;  %v631_v26 = vld [vmem:[%s3006_s1 + $0x6d0] sm:$0xff]  ;;  %v632_v27 = vld [vmem:[%s3006_s1 + $0x6d8] sm:$0xff] }
  0x5d   : > { %1794 = vmatpush3.bf16.msra.mxu1 %v749_v56  ;;  %1773 = vmatprep.subr.bf16.mxu0 %v740_v57  ;;  %v541_v56 = vld [vmem:[%s3006_s1 + $0x400] sm:$0xff]  ;;  %v542_v57 = vld [vmem:[%s3006_s1 + $0x408] sm:$0xff]  ;;  %v751_v59 = vpack.c.bf16 %v590_v52, %v589_v51  ;;  %v772_v32 = vpack.c.bf16 %v632_v27, %v631_v26  ;;  %v615_v33 = vld [vmem:[%s3006_s1 + $0x650] sm:$0xff] }
  0x5e   : > { %1795 = vmatprep.subr.bf16.mxu1 %v756_v61  ;;  %v635_v61 = vld [vmem:[%s3006_s1 + $0x6f0] sm:$0xff]  ;;  %v727_v0 = vpack.c.bf16 %v542_v57, %v541_v56  ;;  %v394_v14 = vld [vmem:[%s2294_s19 + $0xe8] sm:$0xff]  ;;  %v616_v34 = vld [vmem:[%s3006_s1 + $0x658] sm:$0xff] }
  0x5f   : > { %v618_v22 = vld [vmem:[%s3006_s1 + $0x668] sm:$0xff]  ;;  %v410_v28 = vpack.c.bf16 %v394_v14, %v378_v13  ;;  %v648_v36 = vld [vmem:[%s3006_s1 + $0x758] sm:$0xff]  ;;  %v629_v37 = vld [vmem:[%s3006_s1 + $0x6c0] sm:$0xff]  ;;  %v764_v39 = vpack.c.bf16 %v616_v34, %v615_v33 }
  0x60   : > { %1774 = vmatpush3.bf16.msra.mxu0 %v732_v5  ;;  %v774_v5 = vpack.c.bf16 %v636_v62, %v635_v61  ;;  %v650_v25 = vld [vmem:[%s3006_s1 + $0x768] sm:$0xff]  ;;  %v645_v44 = vld [vmem:[%s3006_s1 + $0x740] sm:$0xff]  ;;  %v627_v46 = vld [vmem:[%s3006_s1 + $0x6b0] sm:$0xff] }
  0x61   : > { %1796 = vmatpush3.bf16.msra.mxu1 %v748_v6  ;;  %1775 = vmatprep.subr.bf16.mxu0 %v739_v7  ;;  %v619_v6 = vld [vmem:[%s3006_s1 + $0x670] sm:$0xff]  ;;  %v620_v7 = vld [vmem:[%s3006_s1 + $0x678] sm:$0xff]  ;;  %v630_v38 = vld [vmem:[%s3006_s1 + $0x6c8] sm:$0xff] }
  0x62   : > { %1797 = vmatprep.subr.bf16.mxu1 %v755_v11  ;;  %v634_v11 = vld [vmem:[%s3006_s1 + $0x6e8] sm:$0xff]  ;;  %v766_v16 = vpack.c.bf16 %v620_v7, %v619_v6  ;;  %v611_v51 = vld [vmem:[%s3006_s1 + $0x630] sm:$0xff]  ;;  %v612_v52 = vld [vmem:[%s3006_s1 + $0x638] sm:$0xff] }
  0x63   : > { %v773_v20 = vpack.c.bf16 %v634_v11, %v633_v10  ;;  %v646_v45 = vld [vmem:[%s3006_s1 + $0x748] sm:$0xff]  ;;  %v762_v57 = vpack.c.bf16 %v612_v52, %v611_v51  ;;  %v609_v60 = vld [vmem:[%s3006_s1 + $0x620] sm:$0xff]  ;;  %v624_v1 = vld [vmem:[%s3006_s1 + $0x698] sm:$0xff] }
  0x64   : > { %1776 = vmatpush3.bf16.msra.mxu0 %v731_v17  ;;  %v380_v17 = vld [vmem:[%s2294_s19 + $0x78] sm:$0xff]  ;;  %v779_v49 = vpack.c.bf16 %v646_v45, %v645_v44  ;;  %v626_v56 = vld [vmem:[%s3006_s1 + $0x6a8] sm:$0xff]  ;;  %v641_v62 = vld [vmem:[%s3006_s1 + $0x720] sm:$0xff] }
  0x65   : > { %1798 = vmatpush3.bf16.msra.mxu1 %v747_v18  ;;  %1777 = vmatprep.subr.bf16.mxu0 %v738_v19  ;;  %v396_v18 = vld [vmem:[%s2294_s19 + $0xf8] sm:$0xff]  ;;  %v782_v19 = vpack.c.bf16 %v652_v9, %v651_v8  ;;  %v610_v61 = vld [vmem:[%s3006_s1 + $0x628] sm:$0xff]  ;;  %v639_v7 = vld [vmem:[%s3006_s1 + $0x710] sm:$0xff] }
  0x66   : > { %1799 = vmatprep.subr.bf16.mxu1 %v754_v23  ;;  %v649_v23 = vld [vmem:[%s3006_s1 + $0x760] sm:$0xff]  ;;  %v642_v63 = vld [vmem:[%s3006_s1 + $0x728] sm:$0xff]  ;;  %v761_v2 = vpack.c.bf16 %v610_v61, %v609_v60  ;;  %v608_v6 = vld [vmem:[%s3006_s1 + $0x618] sm:$0xff] }
  0x67   : > { %v777_v3 = vpack.c.bf16 %v642_v63, %v641_v62  ;;  %v640_v8 = vld [vmem:[%s3006_s1 + $0x718] sm:$0xff]  ;;  %v621_v9 = vld [vmem:[%s3006_s1 + $0x680] sm:$0xff]  ;;  %v622_v10 = vld [vmem:[%s3006_s1 + $0x688] sm:$0xff] }
  0x68   : > { %1778 = vmatpush3.bf16.msra.mxu0 %v730_v29  ;;  %v412_v29 = vpack.c.bf16 %v396_v18, %v380_v17  ;;  %v767_v13 = vpack.c.bf16 %v622_v10, %v621_v9  ;;  %v605_v14 = vld [vmem:[%s3006_s1 + $0x600] sm:$0xff]  ;;  %v638_v17 = vld [vmem:[%s3006_s1 + $0x708] sm:$0xff]  ;;  %v659_v27 = vld [vmem:[%s3006_s1 + $0x7b0] sm:$0xff] }
  0x69   : > { %1800 = vmatpush3.bf16.msra.mxu1 %v746_v30  ;;  %1779 = vmatprep.subr.bf16.mxu0 %v737_v31  ;;  %v765_v30 = vpack.c.bf16 %v618_v22, %v617_v21  ;;  %v781_v31 = vpack.c.bf16 %v650_v25, %v649_v23  ;;  %v661_v22 = vld [vmem:[%s3006_s1 + $0x7c0] sm:$0xff]  ;;  %v662_v23 = vld [vmem:[%s3006_s1 + $0x7c8] sm:$0xff]  ;;  %v655_v33 = vld [vmem:[%s3006_s1 + $0x790] sm:$0xff] }
  0x6a   : > { %1801 = vmatprep.subr.bf16.mxu1 %v753_v35  ;;  %v647_v35 = vld [vmem:[%s3006_s1 + $0x750] sm:$0xff]  ;;  %v787_v26 = vpack.c.bf16 %v662_v23, %v661_v22  ;;  %v656_v34 = vld [vmem:[%s3006_s1 + $0x798] sm:$0xff] }
  0x6b   : > { %v780_v40 = vpack.c.bf16 %v648_v36, %v647_v35  ;;  %v784_v35 = vpack.c.bf16 %v656_v34, %v655_v33  ;;  %v653_v36 = vld [vmem:[%s3006_s1 + $0x780] sm:$0xff] }
  0x6c   : > { %1780 = vmatpush3.bf16.msra.mxu0 %v729_v41  ;;  %v771_v41 = vpack.c.bf16 %v630_v38, %v629_v37  ;;  %v654_v37 = vld [vmem:[%s3006_s1 + $0x788] sm:$0xff] }
  0x6d   : > { %1802 = vmatpush3.bf16.msra.mxu1 %v745_v42  ;;  %1781 = vmatprep.subr.bf16.mxu0 %v736_v43  ;;  %v613_v42 = vld [vmem:[%s3006_s1 + $0x640] sm:$0xff]  ;;  %v614_v43 = vld [vmem:[%s3006_s1 + $0x648] sm:$0xff]  ;;  %v783_v38 = vpack.c.bf16 %v654_v37, %v653_v36 }
  0x6e   : > { %1803 = vmatprep.subr.bf16.mxu1 %v752_v47  ;;  %v628_v47 = vld [vmem:[%s3006_s1 + $0x6b8] sm:$0xff]  ;;  %v763_v48 = vpack.c.bf16 %v614_v43, %v613_v42  ;;  %v1129_v42 = vld [vmem:[%s3008_s3] sm:$0x3f] }
  0x6f   : > { %v770_v50 = vpack.c.bf16 %v628_v47, %v627_v46 }
  0x70   : > { %1782 = vmatpush3.bf16.msra.mxu0 %v728_v53  ;;  %v643_v53 = vld [vmem:[%s3006_s1 + $0x730] sm:$0xff] }
  0x71   : > { %1804 = vmatpush3.bf16.msra.mxu1 %v744_v54  ;;  %1783 = vmatprep.subr.bf16.mxu0 %v735_v55  ;;  %v644_v54 = vld [vmem:[%s3006_s1 + $0x738] sm:$0xff]  ;;  %v625_v55 = vld [vmem:[%s3006_s1 + $0x6a0] sm:$0xff] }
  0x72   : > { %1805 = vmatprep.subr.bf16.mxu1 %v751_v59  ;;  %v778_v58 = vpack.c.bf16 %v644_v54, %v643_v53  ;;  %v769_v59 = vpack.c.bf16 %v626_v56, %v625_v55 }
  0x74   : > { %1784 = vmatpush3.bf16.msra.mxu0 %v727_v0  ;;  %v623_v0 = vld [vmem:[%s3006_s1 + $0x690] sm:$0xff] }
  0x75   : > { %1806 = vmatpush3.bf16.msra.mxu1 %v743_v4  ;;  %1813 = vmatprep.subr.bf16.mxu0 %v774_v5  ;;  %v768_v4 = vpack.c.bf16 %v624_v1, %v623_v0  ;;  %v607_v5 = vld [vmem:[%s3006_s1 + $0x610] sm:$0xff] }
  0x76   : > { %1086 = vmatprep.subr.bf16.mxu1 %v2048_v24  ;;  %v760_v11 = vpack.c.bf16 %v608_v6, %v607_v5 }
  0x77   : > { %996 = vmatmul.mubr.bf16.vlgmr.msra.gmra.mxu0 %v405_v12  ;;  %v776_v12 = vpack.c.bf16 %v640_v8, %v639_v7 }
  0x78   : > { %1037 = vmatmul.mubr.bf16.vlgmr.msra.gmra.mxu1 %v407_v15  ;;  %1814 = vmatpush3.bf16.msra.mxu0 %v766_v16  ;;  %v606_v15 = vld [vmem:[%s3006_s1 + $0x608] sm:$0xff]  ;;  %v637_v16 = vld [vmem:[%s3006_s1 + $0x700] sm:$0xff] }
  0x79   : > { %1087 = vmatpush1.bf16.msra.mxu1 %v782_v19  ;;  %1815 = vmatprep.subr.bf16.mxu0 %v773_v20  ;;  %v759_v18 = vpack.c.bf16 %v606_v15, %v605_v14  ;;  %v377_v19 = vld [vmem:[%s2294_s19 + $0x60] sm:$0xff]  ;;  %v775_v21 = vpack.c.bf16 %v638_v17, %v637_v16 }
  0x7a   : > { %1088 = vmatprep.subr.bf16.mxu1 %v2048_v24  ;;  %1077 = vmatprep.mubr.bf16.mxu0 %v410_v28  ;;  %v393_v20 = vld [vmem:[%s2294_s19 + $0xe0] sm:$0xff]  ;;  %v660_v28 = vld [vmem:[%s3006_s1 + $0x7b8] sm:$0xff] }
  0x7b   : > { %1647 = vmatprep.mubr.msk.bf16.mxu1 %vm795_vm0, %v412_v29  ;;  %v409_v25 = vpack.c.bf16 %v393_v20, %v377_v19  ;;  %v786_v29 = vpack.c.bf16 %v660_v28, %v659_v27 }
  0x7c   : > { %1816 = vmatpush3.bf16.msra.mxu0 %v765_v30  ;;  %v657_v30 = vld [vmem:[%s3006_s1 + $0x7a0] sm:$0xff] }
  0x7d   : > { %1089 = vmatpush1.bf16.msra.mxu1 %v781_v31  ;;  %1817 = vmatprep.subr.bf16.mxu0 %v772_v32  ;;  %v658_v31 = vld [vmem:[%s3006_s1 + $0x7a8] sm:$0xff] }
  0x7e   : > { %1090 = vmatprep.subr.bf16.mxu1 %v2048_v24  ;;  %v785_v32 = vpack.c.bf16 %v658_v31, %v657_v30 }
  0x80   : > { %1818 = vmatpush3.bf16.msra.mxu0 %v764_v39  ;;  %v379_v39 = vld [vmem:[%s2294_s19 + $0x70] sm:$0xff] }
  0x81   : > { %1091 = vmatpush1.bf16.msra.mxu1 %v780_v40  ;;  %1819 = vmatprep.subr.bf16.mxu0 %v771_v41  ;;  %v395_v40 = vld [vmem:[%s2294_s19 + $0xf0] sm:$0xff] }
  0x82   : > { %1092 = vmatprep.subr.bf16.mxu1 %v2048_v24  ;;  %v411_v41 = vpack.c.bf16 %v395_v40, %v379_v39 }
  0x84   : > { %1820 = vmatpush3.bf16.msra.mxu0 %v763_v48 }
  0x85   : > { %1093 = vmatpush1.bf16.msra.mxu1 %v779_v49  ;;  %1821 = vmatprep.subr.bf16.mxu0 %v770_v50 }
  0x86   : > { %1094 = vmatprep.subr.bf16.mxu1 %v2048_v24 }
  0x88   : > { %1822 = vmatpush3.bf16.msra.mxu0 %v762_v57 }
  0x89   : > { %1095 = vmatpush1.bf16.msra.mxu1 %v778_v58  ;;  %1823 = vmatprep.subr.bf16.mxu0 %v769_v59  ;;  %v1646_v59 = vld [vmem:[%s3007_s2] ss:$0 sm:$0xff] }
  0x8a   : > { %1096 = vmatprep.subr.bf16.mxu1 %v2048_v24 }
  0x8c   : > { %1824 = vmatpush3.bf16.msra.mxu0 %v761_v2 }
  0x8d   : > { %1097 = vmatpush1.bf16.msra.mxu1 %v777_v3  ;;  %1825 = vmatprep.subr.bf16.mxu0 %v768_v4 }
  0x8e   : > { %1098 = vmatprep.subr.bf16.mxu1 %v2048_v24 }
  0x90   : > { %1826 = vmatpush3.bf16.msra.mxu0 %v760_v11 }
  0x91   : > { %1099 = vmatpush1.bf16.msra.mxu1 %v776_v12  ;;  %1827 = vmatprep.subr.bf16.mxu0 %v767_v13 }
  0x92   : > { %1100 = vmatprep.subr.bf16.mxu1 %v2048_v24 }
  0x94   : > { %1828 = vmatpush3.bf16.msra.mxu0 %v759_v18 }
  0x95   : > { %1101 = vmatpush1.bf16.msra.mxu1 %v775_v21  ;;  %1844 = vmatprep.subr.msk.mxu0 %vm1144_vm1, %v1129_v42 }
  0x96   : > { %1108 = vmatprep.subr.bf16.mxu1 %v2048_v24 }
  0x97   : > { %1078 = vmatmul.mubr.bf16.vlgmr.msra.gmra.mxu0 %v409_v25 }
  0x98   : > { %1845 = vmatpush3.msk.msra.mxu0 %vm1144_vm1, %v1129_v42 }
  0x99   : > { %1109 = vmatpush2.bf16.msra.mxu1 %v787_v26 }
  0x9a   : > { %1110 = vmatprep.subr.bf16.mxu1 %v2048_v24 }
  0x9d   : > { %1111 = vmatpush2.bf16.msra.mxu1 %v786_v29 }
  0x9e   : > { %1112 = vmatprep.subr.bf16.mxu1 %v2048_v24 }
  0xa1   : > { %1113 = vmatpush2.bf16.msra.mxu1 %v785_v32 }
  0xa2   : > { %1114 = vmatprep.subr.bf16.mxu1 %v2048_v24 }
  0xa5   : > { %1115 = vmatpush2.bf16.msra.mxu1 %v784_v35 }
  0xa6   : > { %1116 = vmatprep.subr.bf16.mxu1 %v2048_v24 }
  0xa9   : > { %1117 = vmatpush2.bf16.msra.mxu1 %v783_v38 }
  0xac   : > { %1119 = vmatmul.mubr.bf16.vlgmr.msra.gmra.mxu1 %v411_v41 }
  0xf7   : > { %v1697_v43 = vpop.f32.mrf.mxu0 }
  0xf8   : > { %v1719_v47 = vpop.f32.mrf.mxu1 }
  0xf9   : > { %v1698_v44 = vpop.f32.mrf.mxu0 }
  0xfa   : > { %v1720_v49 = vpop.f32.mrf.mxu1  ;;  %v1699_v58 = vadd.f32 %v1698_v44, %v1697_v43  ;;  %v1225_v44 = vld [vmem:[%s3010_s5] sm:$0xf] }
  0xfb   : > { %v1700_v45 = vpop.f32.mrf.mxu0  ;;  %v1721_v2 = vadd.f32 %v1720_v49, %v1719_v47  ;;  %1849 = vmatprep.subr.msk.mxu0 %vm1240_vm3, %v1225_v44 }
  0xfc   : > { %v1722_v51 = vpop.f32.mrf.mxu1  ;;  %v834_v62 = vadd.f32 %v1699_v58, %v1646_v59 }
  0xfd   : > { %v1701_v46 = vpop.f32.mrf.mxu0 }
  0xfe   : > { %v1723_v52 = vpop.f32.mrf.mxu1  ;;  %v1702_v63 = vadd.f32 %v1701_v46, %v1700_v45  ;;  %v875_v6 = vadd.f32 %v1721_v2, %v834_v62  ;;  %v1648_v45 = vld [vmem:[%s3009_s4] ss:$0 sm:$0xff] }
  0xff   : > { %v1724_v8 = vadd.f32 %v1723_v52, %v1722_v51  ;;  %v1652_v52 = vld [vmem:[%s3011_s6] ss:$0 sm:$0xff] }
 0x100   : > { %v837_v7 = vadd.f32 %v1702_v63, %v1646_v59  ;;  %v1656_v59 = vld [vmem:[#allocation2] ss:$0 sm:$0xff] }
 0x102   : > { %v878_v13 = vadd.f32 %v1724_v8, %v837_v7 }
 0x117   : > { %v1741_v48 = vpop.f32.mrf.mxu0 }
 0x118   : > { %v1763_v54 = vpop.f32.mrf.mxu1 }
 0x119   : > { %v1742_v50 = vpop.f32.mrf.mxu0 }
 0x11a   : > { %v1764_v56 = vpop.f32.mrf.mxu1  ;;  %v1743_v3 = vadd.f32 %v1742_v50, %v1741_v48 }
 0x11b   : > { %v1744_v24 = vpop.f32.mrf.mxu0  ;;  %v1765_v14 = vadd.f32 %v1764_v56, %v1763_v54 }
 0x11c   : > { %v1766_v60 = vpop.f32.mrf.mxu1  ;;  %v916_v9 = vadd.f32 %v1743_v3, %v875_v6 }
 0x11d   : > { %v1745_v53 = vpop.f32.mrf.mxu0 }
 0x11e   : > { %v1767_v0 = vpop.f32.mrf.mxu1  ;;  %v1746_v10 = vadd.f32 %v1745_v53, %v1744_v24  ;;  %v957_v16 = vadd.f32 %v1765_v14, %v916_v9  ;;  %v1321_v24 = vld [vmem:[%s3012_s7] sm:$0x7] }
 0x11f   : > { %v1768_v20 = vadd.f32 %v1767_v0, %v1766_v60 }
 0x120   : > { %v919_v17 = vadd.f32 %v1746_v10, %v878_v13 }
 0x122   : > { %v960_v23 = vadd.f32 %v1768_v20, %v919_v17 }
 0x137   : > { %v1785_v55 = vpop.f32.mrf.mxu0 }
 0x138   : > { %v1807_v4 = vpop.f32.mrf.mxu1 }
 0x139   : > { %v1786_v57 = vpop.f32.mrf.mxu0 }
 0x13a   : > { %v1808_v11 = vpop.f32.mrf.mxu1  ;;  %v1787_v15 = vadd.f32 %v1786_v57, %v1785_v55 }
 0x13b   : > { %v1788_v61 = vpop.f32.mrf.mxu0  ;;  %v1809_v25 = vadd.f32 %v1808_v11, %v1807_v4 }
 0x13c   : > { %v1810_v18 = vpop.f32.mrf.mxu1  ;;  %v998_v21 = vadd.f32 %v1787_v15, %v957_v16 }
 0x13d   : > { %v1789_v1 = vpop.f32.mrf.mxu0 }
 0x13e   : > { %v1790_v22 = vadd.f32 %v1789_v1, %v1788_v61  ;;  %v1811_v27 = vpop.f32.mrf.mxu1  ;;  %v1039_v29 = vadd.f32 %v1809_v25, %v998_v21 }
 0x13f   : > { %v1812_v31 = vadd.f32 %v1811_v27, %v1810_v18 }
 0x140   : > { %v1001_v30 = vadd.f32 %v1790_v22, %v960_v23 }
 0x142   : > { %v1042_v35 = vadd.f32 %v1812_v31, %v1001_v30 }
 0x157   : > { %v1829_v5 = vpop.f32.mrf.mxu0 }
 0x159   : > { %v1830_v12 = vpop.f32.mrf.mxu0 }
 0x15a   : > { %v1831_v26 = vadd.f32 %v1830_v12, %v1829_v5 }
 0x15b   : > { %v1832_v19 = vpop.f32.mrf.mxu0 }
 0x15c   : > { %v1080_v33 = vadd.f32 %v1831_v26, %v1039_v29 }
 0x15d   : > { %v1833_v28 = vpop.f32.mrf.mxu0 }
 0x15e   : > { %v1834_v32 = vadd.f32 %v1833_v28, %v1832_v19 }
 0x160   : > { %v1083_v38 = vadd.f32 %v1834_v32, %v1042_v35 }
 0x16c   : > { %v1120_v34 = vpop.f32.mrf.mxu1 }
 0x16d   : > { %v1121_v36 = vadd.f32 %v1120_v34, %v1080_v33 }
 0x16e   : > { %v1122_v37 = vpop.f32.mrf.mxu1 }
 0x16f   : > { %1948 = vtanh.f32 %v1121_v36 }
 0x170   : > { %v1123_v39 = vpop.f32.mrf.mxu1 }
 0x171   : > { %v1124_v40 = vadd.f32 %v1123_v39, %v1083_v38 }
 0x172   : > { %v1125_v41 = vpop.f32.mrf.mxu1 }
 0x173   : > { %1950 = vtanh.f32 %v1124_v40 }
 0x17c   : > { %v1949_v42 = vpop.eup %1948 }
 0x17d   : > { %1846 = vmatprep.mubr.msk.f32.mxu0 %vm1137_vm2, %v1949_v42 }
 0x180   : > { %v1951_v43 = vpop.eup %1950 }
 0x181   : > { %1847 = vmatmul.mubr.msk.f32.vlgmr.msra.gmra.mxu0 %vm1137_vm2, %v1951_v43 }
 0x182   : > { %1850 = vmatpush3.msk.msra.mxu0 %vm1240_vm3, %v1225_v44 }
 0x183   : > { %1854 = vmatprep.subr.msk.mxu0 %vm1336_vm5, %v1321_v24 }
 0x241   : > { %v1848_v46 = vpop.f32.mrf.mxu0 }
 0x242   : > { %v1220_v47 = vadd.f32 %v1848_v46, %v1648_v45 }
 0x243   : > { %v1214_v48 = vpop.f32.mrf.mxu0 }
 0x244   : > { %v1215_v49 = vadd.f32 %v1648_v45, %v1214_v48 }
 0x246   : > { %1952 = vtanh.f32 %v1215_v49 }
 0x247   : > { %1954 = vtanh.f32 %v1220_v47 }
 0x253   : > { %v1953_v50 = vpop.eup %1952 }
 0x254   : > { %v1955_v51 = vpop.eup %1954  ;;  %1851 = vmatprep.mubr.msk.f32.mxu0 %vm1233_vm4, %v1953_v50 }
 0x255   : > { %1852 = vmatmul.mubr.msk.f32.vlgmr.msra.gmra.mxu0 %vm1233_vm4, %v1955_v51 }
 0x256   : > { %1855 = vmatpush3.msk.msra.mxu0 %vm1336_vm5, %v1321_v24 }
 0x315   : > { %v1853_v53 = vpop.f32.mrf.mxu0 }
 0x316   : > { %v1316_v54 = vadd.f32 %v1853_v53, %v1652_v52 }
 0x317   : > { %v1310_v55 = vpop.f32.mrf.mxu0 }
 0x318   : > { %v1311_v56 = vadd.f32 %v1652_v52, %v1310_v55 }
 0x31a   : > { %1956 = vtanh.f32 %v1311_v56 }
 0x31b   : > { %1958 = vtanh.f32 %v1316_v54 }
 0x327   : > { %v1957_v57 = vpop.eup %1956 }
 0x328   : > { %v1959_v58 = vpop.eup %1958  ;;  %1856 = vmatprep.mubr.msk.f32.mxu0 %vm1329_vm6, %v1957_v57 }
 0x329   : > { %1857 = vmatmul.mubr.msk.f32.vlgmr.msra.gmra.mxu0 %vm1329_vm6, %v1959_v58 }
 0x3e9   : > { %v1858_v60 = vpop.f32.mrf.mxu0 }
 0x3ea   : > { %v1412_v61 = vadd.f32 %v1858_v60, %v1656_v59  ;;  %1424 = sbr.rel (!%p2127_p4) target bundleno = 1046 (0x416), region = 60 }
 0x3eb   : > { %v1406_v62 = vpop.f32.mrf.mxu0 }
 0x3ec   : > { %1417 = vst.msk [vmem:[%s2960_s16 + $0x8] sm:$0xff] %vm1415_vm7, %v1412_v61  ;;  %v1407_v63 = vadd.f32 %v1656_v59, %v1406_v62 }
 0x3ee   : > { %1416 = vst.msk [vmem:[%s2960_s16] sm:$0xff] %vm1415_vm7, %v1407_v63 }
 0x3ef   : > { %s3020_s26 = smov (!%p1427_p8, %s1426_s26), 2 }
 0x3f0   : > { %s1662_s29 = sshll.u32 %s3020_s26, 7 }
 0x3f1   : > { %p1665_p9 = scmp.eq.s32.totalorder %s1662_s29, 0 }
 0x3f2   : > { %s2977_s10 = sshrl.u32 (!%p1665_p9), %s3020_s26, 1 }
 0x3f3   : > { %1435 = sbr.rel (%p1665_p9) target bundleno = 1046 (0x416), region = 64  ;;  %p1666_p10 = scmp.le.s32.totalorder (!%p1665_p9), %s2977_s10, 0 }
 0x3f8   : > { %1594 = sbr.rel (%p1666_p10) target bundleno = 1029 (0x405), region = 140  ;;  %s2016_s8 = smov (!%p1666_p10), %s2971_s28  }
 0x3f9   : > { %s2020_s18 = smov (!%p1666_p10), %s2960_s16   ;;  %s2024_s15 = smov (!%p1666_p10), 0  }
 0x3fa   : > { %s2028_s13 = smov (!%p1666_p10), 0  }
 0x3fd LB: >> { %v1500_v0 = vld [vmem:[%s2022_s18] sm:$0xff]  ;;  %v1502_v1 = vld [vmem:[%s2022_s18 + $0x8] sm:$0xff]  ;;  %s1504_s20 = sadd.s32 1, %s2026_s15  ;;  %s1494_s13 = sadd.s32 1, %s2030_s13   ;;  %s2030_s13 = sphi %s2028_s13, %s1494_s13   ;;  %s2026_s15 = sphi %s2024_s15, %s2025_s15   ;;  %s2022_s18 = sphi %s2020_s18, %s1509_s18   ;;  %s2018_s8 = sphi %s2016_s8, %s1510_s8  }
 0x3fe   : >> { %1501 = vst [vmem:[%s2018_s8] sm:$0xff] %v1500_v0  ;;  %1503 = vst [vmem:[%s2018_s8 + $0x8] sm:$0xff] %v1502_v1  ;;  %p1505_p11 = scmp.ge.s32.totalorder %s1504_s20, %s2977_s10  ;;  %p1493_p12 = scmp.ge.s32.totalorder %s1494_s13, %s2977_s10 }
 0x400   : >> { %s3022_s20 = smov (%p1505_p11, %s1504_s20), 0  ;;  %1496 = sbr.rel (!%p1493_p12) target bundleno = 1021 (0x3fd), region = 146 }
 0x401   : >> { %s1667_s21 = sshll.u32 %s3022_s20, 4  ;;  %s2025_s15 = smov %s3022_s20  }
 0x402   : >> { %s1509_s18 = scalar_lea.vmem %s2960_s16, %s1667_s21 [#allocation3]   ;;  %s1510_s8 = scalar_lea.vmem %s2971_s28, %s1667_s21  }
 0x405 PF: > { %s2987_s22 = sand.u32 1, %s3020_s26   ;;  %s1679_s23 = sshll.u32 %s2977_s10, 4 }
 0x406   : > { %s1515_s24 = scalar_lea.vmem %s2960_s16, %s1679_s23 [#allocation3]   ;;  %s1517_s30 = scalar_lea.vmem %s2971_s28, %s1679_s23  }
 0x407   : > { %p1672_p13 = scmp.le.s32.totalorder %s2987_s22, 0 }
 0x408   : > { %s2032_s25 = smov (!%p1672_p13), %s1517_s30   ;;  %s2036_s11 = smov (!%p1672_p13), %s1515_s24  }
 0x409   : > { %1608 = sbr.rel (%p1672_p13) target bundleno = 1046 (0x416), region = 151  ;;  %s2040_s27 = smov (!%p1672_p13), 0  }
 0x40a   : > { %s2044_s19 = smov (!%p1672_p13), 0  }
 0x40e LB: >> { %v1527_v2 = vld [vmem:[%s2038_s11] sm:$0xff]  ;;  %s1529_s26 = sadd.s32 1, %s2042_s27  ;;  %s1521_s19 = sadd.s32 1, %s2046_s19   ;;  %s2046_s19 = sphi %s2044_s19, %s1521_s19   ;;  %s2042_s27 = sphi %s2040_s27, %s2041_s27   ;;  %s2038_s11 = sphi %s2036_s11, %s1534_s11   ;;  %s2034_s25 = sphi %s2032_s25, %s1535_s25  }
 0x40f   : >> { %1528 = vst [vmem:[%s2034_s25] sm:$0xff] %v1527_v2  ;;  %p1530_p0 = scmp.ge.s32.totalorder %s1529_s26, %s2987_s22  ;;  %p1520_p1 = scmp.ge.s32.totalorder %s1521_s19, %s2987_s22 }
 0x411   : >> { %s3024_s26 = smov (%p1530_p0, %s1529_s26), 0  ;;  %1523 = sbr.rel (!%p1520_p1) target bundleno = 1038 (0x40e), region = 157 }
 0x412   : >> { %s1673_s16 = sshll.u32 %s3024_s26, 3  ;;  %s2041_s27 = smov %s3024_s26  }
 0x413   : >> { %s1534_s11 = scalar_lea.vmem %s1515_s24, %s1673_s16 [#allocation3]   ;;  %s1535_s25 = scalar_lea.vmem %s1517_s30, %s1673_s16  }
 0x416 PF: > { %p18_p2 = scmp.ge.s32.totalorder %s2117_s14, 4   ;;  %s3016_s11 = smov %s2010_s12 }
 0x417   : > { %s3017_s12 = smov %s2125_s17  ;;  %s3018_s13 = smov %s2117_s14 }
 0x418   :  { %20 = sbr.rel (!%p18_p2) target bundleno = 5 (0x5), region = 168 }

</bundles_post_ra>
